<compile_context>
chip_gen: v5e
topology: v5e:2x2
jax: 0.10.0
libtpu: 0.0.40
codegen_flags: <defaults>
</compile_context>

<pallas_src>
import functools

import jax
import jax.numpy as jnp
from jax.experimental import pallas as pl
from jax.experimental.pallas import tpu as pltpu


def _inverse_softplus_kernel(y_ref, o_ref, *, beta, threshold):
    # Upcast to f32 only inside the kernel; HBM traffic stays in native dtype.
    y = y_ref[...].astype(jnp.float32)
    # Numerically stable inverse softplus:
    #   log(exp(b*y) - 1)/b  ==  y + log1p(-exp(-b*y))/b
    # Never overflows (no clamp/select needed) and avoids catastrophic
    # cancellation for small y.  Exactly 2 transcendentals per element.
    inv = y + jnp.log1p(-jnp.exp(-beta * y)) * (1.0 / beta)
    out = jnp.where(y * beta > threshold, y, inv)
    o_ref[...] = out.astype(o_ref.dtype)


def inverse_softplus_pallas(y, beta=1.0, threshold=20.0, *, tile_rows=4096):
    orig_shape = y.shape
    dtype = y.dtype
    n = y.size
    lanes = 128

    flat = jnp.ravel(y)  # free reshape for contiguous arrays
    rem = n % lanes
    padded = rem != 0
    if padded:
        # Rare path: pad only up to the next full 128-lane row.
        flat = jnp.concatenate(
            [flat, jnp.full((lanes - rem,), 1.0, dtype=dtype)]
        )
    rows = flat.size // lanes
    y2d = flat.reshape(rows, lanes)

    if rows <= tile_rows:
        # Full-extent block (allowed even when rows is not a multiple of 8).
        block_rows = rows
    else:
        # 4096 x 128 x f32 = 2 MiB/block; 2 double-buffered operands = 8 MiB,
        # comfortably under v5e's 16 MiB default scoped VMEM.  Ragged last
        # block is handled by the cdiv grid (masked writeback).
        block_rows = tile_rows
    grid = (pl.cdiv(rows, block_rows),)

    kernel = functools.partial(
        _inverse_softplus_kernel, beta=float(beta), threshold=float(threshold)
    )

    out2d = pl.pallas_call(
        kernel,
        out_shape=jax.ShapeDtypeStruct((rows, lanes), dtype),
        grid_spec=pltpu.PrefetchScalarGridSpec(
            num_scalar_prefetch=0,
            grid=grid,
            in_specs=[pl.BlockSpec((block_rows, lanes), lambda i: (i, 0))],
            out_specs=pl.BlockSpec((block_rows, lanes), lambda i: (i, 0)),
        ),
        compiler_params=pltpu.CompilerParams(
            dimension_semantics=("parallel",),  # shards grid across TCs on v7x
        ),
    )(y2d)

    if padded:
        return out2d.reshape(-1)[:n].reshape(orig_shape)
    return out2d.reshape(orig_shape)


class InverseSoftplus:
    """JAX/Pallas equivalent of the PyTorch InverseSoftplus module."""

    def __init__(self, beta=1, threshold=20):
        self._beta = beta
        self._threshold = threshold

    def __call__(self, y):
        return inverse_softplus_pallas(y, self._beta, self._threshold)


def _reference(y, beta=1.0, threshold=20.0):
    # Literal port of the PyTorch spec.
    return jnp.where(
        y * beta > threshold,
        y,
        jnp.log(jnp.exp(beta * y) - 1.0) / beta,
    )


if __name__ == "__main__":
    key = jax.random.PRNGKey(0)
    # Softplus outputs are strictly positive; include values above the
    # threshold to exercise the linear branch.
    x = jax.random.uniform(
        key, (2, 4, 16, 16), dtype=jnp.float32, minval=0.05, maxval=30.0
    )

    module = InverseSoftplus(beta=1, threshold=20)
    out = jax.block_until_ready(module(x))

    ref = _reference(x, 1.0, 20.0)
    assert out.shape == x.shape and out.dtype == x.dtype
    assert jnp.allclose(out, ref, rtol=1e-5, atol=1e-5), "mismatch vs reference"

    # Second case: numel not a multiple of 128 (exercises the pad path).
    key2 = jax.random.PRNGKey(1)
    x2 = jax.random.uniform(
        key2, (3, 5, 7), dtype=jnp.float32, minval=0.05, maxval=30.0
    )
    out2 = jax.block_until_ready(module(x2))
    ref2 = _reference(x2, 1.0, 20.0)
    assert out2.shape == x2.shape and out2.dtype == x2.dtype
    assert jnp.allclose(out2, ref2, rtol=1e-5, atol=1e-5), "mismatch (padded)"

    print("KERNEL_OK")
</pallas_src>

<mosaic_0001>
module attributes {stable_mosaic.version = 11 : i64} {
  func.func @_inverse_softplus_kernel(%arg0: i32, %arg1: memref<16x128xf32, #tpu.memory_space<vmem>>, %arg2: memref<16x128xf32, #tpu.memory_space<vmem>>) attributes {dimension_semantics = [#tpu.dimension_semantics<parallel>], iteration_bounds = array<i64: 1>, scalar_prefetch = 0 : i64, scratch_operands = 0 : i64, tpu.core_type = #tpu.core_type<tc>, window_params = [{transform_indices = @transform_0, window_bounds = array<i64: 16, 128>}, {transform_indices = @transform_1, window_bounds = array<i64: 16, 128>}]} {
    %c0 = arith.constant 0 : index
    %c0_0 = arith.constant 0 : index
    %0 = vector.load %arg1[%c0, %c0_0] : memref<16x128xf32, #tpu.memory_space<vmem>>, vector<16x128xf32>
    %cst = arith.constant -1.000000e+00 : f32
    %1 = vector.broadcast %cst : f32 to vector<16x128xf32>
    %2 = arith.mulf %1, %0 : vector<16x128xf32>
    %3 = math.exp %2 : vector<16x128xf32>
    %cst_1 = arith.constant 0.000000e+00 : f32
    %4 = vector.broadcast %cst_1 : f32 to vector<16x128xf32>
    %5 = arith.subf %4, %3 : vector<16x128xf32>
    %6 = math.log1p %5 : vector<16x128xf32>
    %cst_2 = arith.constant 1.000000e+00 : f32
    %7 = vector.broadcast %cst_2 : f32 to vector<16x128xf32>
    %8 = arith.mulf %6, %7 : vector<16x128xf32>
    %9 = arith.addf %0, %8 : vector<16x128xf32>
    %cst_3 = arith.constant 1.000000e+00 : f32
    %10 = vector.broadcast %cst_3 : f32 to vector<16x128xf32>
    %11 = arith.mulf %0, %10 : vector<16x128xf32>
    %cst_4 = arith.constant 2.000000e+01 : f32
    %12 = vector.broadcast %cst_4 : f32 to vector<16x128xf32>
    %13 = arith.cmpf ogt, %11, %12 : vector<16x128xf32>
    %14 = arith.select %13, %0, %9 : vector<16x128xi1>, vector<16x128xf32>
    %c0_5 = arith.constant 0 : index
    %c0_6 = arith.constant 0 : index
    %15 = vector.load %arg2[%c0_5, %c0_6] : memref<16x128xf32, #tpu.memory_space<vmem>>, vector<16x128xf32>
    tpu.vector_store %arg2[%c0_5, %c0_6], %14 {strides = array<i32>} : memref<16x128xf32, #tpu.memory_space<vmem>>, vector<16x128xf32>,
    return
  }
  func.func @transform_0(%arg0: i32) -> (i32, i32) {
    %c0_i32 = arith.constant 0 : i32
    %c0_i32_0 = arith.constant 0 : i32
    return %arg0, %c0_i32 : i32, i32
  }
  func.func @transform_1(%arg0: i32) -> (i32, i32) {
    %c0_i32 = arith.constant 0 : i32
    %c0_i32_0 = arith.constant 0 : i32
    return %arg0, %c0_i32 : i32, i32
  }
}

</mosaic_0001>

<bundles_post_ra>
// kernel: tpu_custom_call.1
= control target key start
LH: loop header
LB: loop body
LE: loop exit
PB: predicated region body
PF: predicated region fallthrough
CT: control target
= control target key end

     0   :  { %6 = vsyncpa [#allocation3], 0  ;;  %s170_s0 = inlined_call_operand.hbm [shape: f32[16,128], index: 0, kind: input, shape index: {}]   ;;  %s171_s1 = inlined_call_operand.hbm [shape: f32[16,128], index: 1, kind: output, shape index: {}]  }
   0x1   :  { %7 = vsyncpa [#allocation4], 0  ;;  %s12_s8 = sshll.u32 %s170_s0, 4  ;;  %s144_s9 = smov [#allocation2]   ;;  %s13_s8 = int_to_ptr.hbm [resolvable:$true] %s12_s8 }
   0x2   :  { %s14_s10 = sshll.u32 %s144_s9, 4  ;;  %s145_s11 = smov 128   ;;  %s15_s10 = int_to_ptr.vmem [resolvable:$true] %s14_s10 }
   0x3   :  { %s146_s12 = smov 8  }
   0x4   :  { %20 = dma.hbm_to_vmem [thread:$0]  %s13_s8, 256, %s15_s10, [#allocation3], %s145_s11, %s145_s11, %s146_s12  }
   0x5   :  { %140 = dma.done.wait [#allocation3], 256  }
   0x6   :  { %141 = vsyncadd [#allocation3], 4294967040  ;;  %v25_v0 = vld [vmem:[#allocation2] sm:$0xff]  ;;  %v26_v1 = vld [vmem:[#allocation2 + $0x8] sm:$0xff]  ;;  %s147_s0 = smov [#allocation5]   ;;  %s67_s16 = sshll.u32 %s171_s1, 4  ;;  %s68_s16 = int_to_ptr.hbm [resolvable:$true] %s67_s16 }
   0x7   :  { %v27_v2 = vmul.f32 -1.0, %v25_v0  ;;  %v28_v3 = vmul.f32 -1.0, %v26_v1  ;;  %vm55_vm2 = vcmp.gt.f32.partialorder %v25_v0, 20.0  ;;  %s65_s13 = sshll.u32 %s147_s0, 4  ;;  %vm56_vm3 = vcmp.gt.f32.partialorder %v26_v1, 20.0  ;;  %s66_s13 = int_to_ptr.vmem [resolvable:$true] %s65_s13 }
   0x9   :  { %v29_v4 = vmul.f32 1.442695, %v27_v2  ;;  %v31_v5 = vmul.f32 1.442695, %v28_v3 }
   0xb   :  { %84 = vpow2.f32 %v29_v4 }
   0xc   :  { %86 = vpow2.f32 %v31_v5 }
  0x11   :  { %v85_v6 = vpop.eup %84 }
  0x12   :  { %v87_v7 = vpop.eup %86  ;;  %v33_v8 = vsub.f32 0.0, %v85_v6 }
  0x13   :  { %v34_v9 = vsub.f32 0.0, %v87_v7 }
  0x14   :  { %v35_v10 = vadd.f32 1.0, %v33_v8  ;;  %v38_v11 = vmul.f32 -0.5, %v33_v8  ;;  %v41_v15 = vand.u32 2147483647, %v33_v8 }
  0x15   :  { %v44_v12 = vadd.f32 1.0, %v34_v9  ;;  %v47_v13 = vmul.f32 -0.5, %v34_v9  ;;  %v50_v17 = vand.u32 2147483647, %v34_v9 }
  0x16   :  { %88 = vlog2.f32 %v35_v10  ;;  %v39_v14 = vadd.f32 1.0, %v38_v11  ;;  %vm42_vm0 = vcmp.lt.f32.partialorder %v41_v15, 0.0004427343 }
  0x17   :  { %90 = vlog2.f32 %v44_v12  ;;  %v48_v16 = vadd.f32 1.0, %v47_v13  ;;  %vm51_vm1 = vcmp.lt.f32.partialorder %v50_v17, 0.0004427343 }
  0x18   :  { %v40_v18 = vmul.f32 %v39_v14, %v33_v8 }
  0x19   :  { %v49_v20 = vmul.f32 %v48_v16, %v34_v9 }
  0x1c   :  { %v89_v19 = vpop.eup %88 }
  0x1d   :  { %v91_v21 = vpop.eup %90  ;;  %v37_v22 = vmul.f32 0.6931472, %v89_v19 }
  0x1e   :  { %v46_v23 = vmul.f32 0.6931472, %v91_v21 }
  0x1f   :  { %v43_v24 = vsel %vm42_vm0, %v40_v18, %v37_v22 }
  0x20   :  { %v53_v25 = vadd.f32 %v43_v24, %v25_v0  ;;  %v52_v26 = vsel %vm51_vm1, %v49_v20, %v46_v23 }
  0x21   :  { %v54_v27 = vadd.f32 %v52_v26, %v26_v1 }
  0x22   :  { %v57_v28 = vsel %vm55_vm2, %v25_v0, %v53_v25 }
  0x23   :  { %59 = vst [vmem:[#allocation5] sm:$0xff] %v57_v28  ;;  %v58_v29 = vsel %vm56_vm3, %v26_v1, %v54_v27 }
  0x24   :  { %60 = vst [vmem:[#allocation5 + $0x8] sm:$0xff] %v58_v29 }
  0x25   :  { %73 = dma.vmem_to_hbm [thread:$0]  %s66_s13, 256, %s68_s16, [#allocation4], %s145_s11, %s145_s11, %s146_s12  }
  0x26   :  { %142 = dma.done.wait [#allocation4], 256  }
  0x27   :  { %143 = vsyncadd [#allocation4], 4294967040 }
  0x28   :  { %78 = vsyncpa [#allocation3], 1 }
  0x29   :  { %79 = vsyncpa [#allocation4], 1 }

</bundles_post_ra>
